<compile_context>
chip_gen: v6e
topology: v6e:2x2x1
jax: 0.10.0
libtpu: 0.0.40
codegen_flags: <defaults>
</compile_context>

<pallas_src>
import functools

import jax
import jax.numpy as jnp
from jax.experimental import pallas as pl
from jax.experimental.pallas import tpu as pltpu


def _round_up(x, m):
    return ((x + m - 1) // m) * m


def _detect_phys_vmem_bytes():
    # Conservative fallback (v7x per-TensorCore VMEM) if detection fails.
    try:
        info = pltpu.get_tpu_info()
        cap = getattr(info, "vmem_capacity_bytes", None)
        if cap:
            return int(cap)
    except Exception:
        pass
    return 64 * 1024 * 1024


_PHYS_VMEM_BYTES = _detect_phys_vmem_bytes()
# Leave headroom for compiler-internal scratch / DMA queues:
#   v7x (64 MiB physical)  -> ~48 MiB request cap
#   v5e/v6e (128 MiB)      -> ~96 MiB request cap
_VMEM_REQUEST_CAP = (_PHYS_VMEM_BYTES * 3) // 4


def _glu_mlp_kernel(x_ref, w1v_ref, b1v_ref, w1g_ref, b1g_ref, w2_ref, b2_ref,
                    o_ref, acc_ref, *, cast_mxu_bf16, approx_sigmoid):
    k = pl.program_id(1)

    @pl.when(k == 0)
    def _init():
        # Fold the fc2 bias into the f32 accumulator initialization.
        acc_ref[...] = jnp.broadcast_to(
            b2_ref[...].astype(jnp.float32), acc_ref.shape)

    x = x_ref[...]
    w1v = w1v_ref[...]
    w1g = w1g_ref[...]
    w2 = w2_ref[...]
    if cast_mxu_bf16 and x.dtype == jnp.float32:
        # bf16 MXU operands (fast path on v5e/v6e/v7x); f32 accumulation kept.
        x, w1v, w1g, w2 = (t.astype(jnp.bfloat16) for t in (x, w1v, w1g, w2))

    # fc1 halves for this hidden chunk (f32 accumulation on the MXU).
    hv = jnp.dot(x, w1v, preferred_element_type=jnp.float32)
    hv = hv + b1v_ref[...].astype(jnp.float32)
    hg = jnp.dot(x, w1g, preferred_element_type=jnp.float32)
    hg = hg + b1g_ref[...].astype(jnp.float32)

    # GLU gating (gate_last=True, act=Sigmoid): value * sigmoid(gate).
    if approx_sigmoid:
        gate = pl.reciprocal(1.0 + jnp.exp(-hg), approx=True)   # EUP slot
    else:
        gate = jax.nn.sigmoid(hg)
    a = hv * gate                                                # (tm, tk) f32

    # fc2 partial product for this chunk, accumulated in f32 VMEM scratch.
    acc_ref[...] += jnp.dot(a.astype(w2.dtype), w2,
                            preferred_element_type=jnp.float32)

    @pl.when(k == pl.num_programs(1) - 1)
    def _finalize():
        o_ref[...] = acc_ref[...].astype(o_ref.dtype)


def _vmem_estimate(tm, din, dout, tk, itemsize):
    dbl = 2                                            # default double-buffering
    x_b = dbl * tm * din * itemsize
    w1_b = dbl * 2 * (din * tk + tk) * itemsize        # value + gate halves + biases
    w2_b = dbl * (tk * dout + dout) * itemsize
    out_b = dbl * tm * dout * itemsize
    acc_b = tm * dout * 4
    tmp_b = 3 * tm * tk * 4                            # hv, hg, gated f32 temps
    slack = 8 * 1024 * 1024                            # compiler-internal scratch
    return x_b + w1_b + w2_b + out_b + acc_b + tmp_b + slack


def _pick_hidden_chunk(h2, tm, din, dout, itemsize, cap):
    """Largest MXU-friendly H/2 chunk whose working set fits the VMEM cap."""
    if h2 <= 512:
        candidates = [h2]
    else:
        candidates = [c for c in (512, 256, 128) if h2 % c == 0]
        if not candidates:
            candidates = [h2]          # ragged H/2: single full-width chunk
    for tk in candidates:
        est = _vmem_estimate(tm, din, dout, tk, itemsize)
        if est <= cap:
            return tk, est
    tk = candidates[-1]
    return tk, _vmem_estimate(tm, din, dout, tk, itemsize)


def _build_call(n_pad, din, h2, dout, dtype, tm, tk, vmem_limit,
                cast_mxu_bf16, approx_sigmoid):
    grid_m = n_pad // tm
    grid_k = h2 // tk
    itemsize = jnp.dtype(dtype).itemsize

    kernel = functools.partial(_glu_mlp_kernel,
                               cast_mxu_bf16=cast_mxu_bf16,
                               approx_sigmoid=approx_sigmoid)

    w_bytes = (2 * (din * h2 + h2) + h2 * dout + dout) * itemsize
    cost = pl.CostEstimate(
        flops=4 * n_pad * din * h2 + 2 * n_pad * h2 * dout,
        transcendentals=n_pad * h2,
        bytes_accessed=n_pad * (din + dout) * itemsize + grid_m * w_bytes,
    )

    return pl.pallas_call(
        kernel,
        out_shape=jax.ShapeDtypeStruct((n_pad, dout), dtype),
        grid_spec=pltpu.PrefetchScalarGridSpec(
            num_scalar_prefetch=0,
            grid=(grid_m, grid_k),
            in_specs=[
                pl.BlockSpec((tm, din), lambda i, k: (i, 0)),     # x tile
                pl.BlockSpec((din, tk), lambda i, k: (0, k)),     # W1 value half
                pl.BlockSpec((1, tk), lambda i, k: (0, k)),       # b1 value half
                pl.BlockSpec((din, tk), lambda i, k: (0, k)),     # W1 gate half
                pl.BlockSpec((1, tk), lambda i, k: (0, k)),       # b1 gate half
                pl.BlockSpec((tk, dout), lambda i, k: (k, 0)),    # W2 chunk
                pl.BlockSpec((1, dout), lambda i, k: (0, 0)),     # b2
            ],
            out_specs=pl.BlockSpec((tm, dout), lambda i, k: (i, 0)),
            scratch_shapes=[pltpu.VMEM((tm, dout), jnp.float32)],
        ),
        compiler_params=pltpu.CompilerParams(
            dimension_semantics=("parallel", "arbitrary"),
            vmem_limit_bytes=int(vmem_limit)),
        cost_estimate=cost,
    )


def glu_mlp_pallas(x, w1, b1, w2, b2, *, tm=None, gate_last=True,
                   cast_mxu_to_bf16=False, approx_sigmoid=False):
    """GluMlp forward (sigmoid GLU, norm=Identity, drop=0).

    x:  [..., Din]
    w1: [Din, H]      (nn.Linear fc1 weight, pre-transposed)
    b1: [H] or [1, H]
    w2: [H//2, Dout]  (nn.Linear fc2 weight, pre-transposed)
    b2: [Dout] or [1, Dout]
    Returns [..., Dout].  Pure function: safe to wrap in jax.jit.
    """
    *lead, din = x.shape
    h = w1.shape[1]
    assert h % 2 == 0, "hidden_features must be even"
    h2 = h // 2
    dout = w2.shape[1]
    assert w1.shape[0] == din and w2.shape[0] == h2

    b1 = b1.reshape(1, h)
    b2 = b2.reshape(1, dout)
    # Split fc1 into value / gate halves (gate_last=True: x1 * sigmoid(x2)).
    if gate_last:
        w1v, w1g = w1[:, :h2], w1[:, h2:]
        b1v, b1g = b1[:, :h2], b1[:, h2:]
    else:
        w1g, w1v = w1[:, :h2], w1[:, h2:]
        b1g, b1v = b1[:, :h2], b1[:, h2:]

    x2d = x.reshape(-1, din)
    n = x2d.shape[0]

    # Token tile: default 256 (512 on 128-MiB-VMEM parts for long sequences),
    # multiple of 16 (bf16 sublane packing).  Ensure >= 2 grid steps whenever N
    # allows it so v7x's second TensorCore gets work.
    if tm is None:
        tm = 512 if (_PHYS_VMEM_BYTES >= 96 * 1024 * 1024 and n >= 2048) else 256
    tm_req = max(16, _round_up(tm, 16))
    if n > 32:
        tm_req = min(tm_req, _round_up(-(-n // 2), 16))
    tm_eff = min(tm_req, _round_up(n, 16))
    n_pad = _round_up(n, tm_eff)
    if n_pad != n:
        x2d = jnp.pad(x2d, ((0, n_pad - n), (0, 0)))

    itemsize = jnp.dtype(x2d.dtype).itemsize
    tk, est = _pick_hidden_chunk(h2, tm_eff, din, dout, itemsize,
                                 _VMEM_REQUEST_CAP)
    vmem_limit = min(_VMEM_REQUEST_CAP, max(32 * 1024 * 1024, est))

    call = _build_call(n_pad, din, h2, dout, x2d.dtype, tm_eff, tk, vmem_limit,
                       cast_mxu_to_bf16, approx_sigmoid)
    out = call(x2d, w1v, b1v, w1g, b1g, w2, b2)

    if n_pad != n:
        out = out[:n]
    return out.reshape(*lead, dout)


def glu_mlp_ref(x, w1, b1, w2, b2):
    xf = x.astype(jnp.float32)
    h = xf @ w1.astype(jnp.float32) + b1.astype(jnp.float32).reshape(1, -1)
    x1, x2 = jnp.split(h, 2, axis=-1)
    a = x1 * jax.nn.sigmoid(x2)
    out = a @ w2.astype(jnp.float32) + b2.astype(jnp.float32).reshape(1, -1)
    return out.astype(x.dtype)


if __name__ == "__main__":
    # Small but lane-dense shapes: batch=2, seq=8 -> N=16 tokens;
    # in=128, hidden=256 (H/2=128), out=128 (all multiples of 128).
    batch, seq = 2, 8
    in_features, hidden_features, out_features = 128, 256, 128

    key = jax.random.PRNGKey(0)
    kx, kw1, kb1, kw2, kb2 = jax.random.split(key, 5)

    x = jax.random.normal(kx, (batch, seq, in_features), jnp.float32)
    # Weights stored transposed vs. nn.Linear: [in, hidden] and [hidden//2, out].
    w1 = jax.random.normal(kw1, (in_features, hidden_features), jnp.float32) * 0.05
    b1 = jax.random.normal(kb1, (hidden_features,), jnp.float32) * 0.05
    w2 = jax.random.normal(kw2, (hidden_features // 2, out_features), jnp.float32) * 0.05
    b2 = jax.random.normal(kb2, (out_features,), jnp.float32) * 0.05

    # f32 check against pure-JAX reference (wrapper is pure -> jit-composable).
    fwd = jax.jit(glu_mlp_pallas)
    out = jax.block_until_ready(fwd(x, w1, b1, w2, b2))
    ref = glu_mlp_ref(x.reshape(-1, in_features), w1, b1, w2, b2).reshape(
        batch, seq, out_features)
    assert out.shape == (batch, seq, out_features)
    err = float(jnp.max(jnp.abs(out - ref)))
    assert err < 5e-3, err

    # bf16 smoke check (fast MXU operand path); f32 accumulation kept in-kernel.
    xb, w1b, b1b, w2b, b2b = (a.astype(jnp.bfloat16) for a in (x, w1, b1, w2, b2))
    outb = jax.block_until_ready(jax.jit(glu_mlp_pallas)(xb, w1b, b1b, w2b, b2b))
    refb = glu_mlp_ref(xb.reshape(-1, in_features), w1b, b1b, w2b, b2b).reshape(
        batch, seq, out_features).astype(jnp.float32)
    assert jnp.allclose(outb.astype(jnp.float32), refb, atol=5e-2, rtol=5e-2)

    print("KERNEL_OK")
</pallas_src>

<mosaic_0001>
module attributes {stable_mosaic.version = 11 : i64} {
  func.func @_glu_mlp_kernel(%arg0: i32, %arg1: i32, %arg2: memref<16x128xf32, #tpu.memory_space<vmem>>, %arg3: memref<128x128xf32, #tpu.memory_space<vmem>>, %arg4: memref<1x128xf32, #tpu.memory_space<vmem>>, %arg5: memref<128x128xf32, #tpu.memory_space<vmem>>, %arg6: memref<1x128xf32, #tpu.memory_space<vmem>>, %arg7: memref<128x128xf32, #tpu.memory_space<vmem>>, %arg8: memref<1x128xf32, #tpu.memory_space<vmem>>, %arg9: memref<16x128xf32, #tpu.memory_space<vmem>>, %arg10: memref<16x128xf32, #tpu.memory_space<vmem>>) attributes {dimension_semantics = [#tpu.dimension_semantics<parallel>, #tpu.dimension_semantics<arbitrary>], iteration_bounds = array<i64: 1, 1>, scalar_prefetch = 0 : i64, scratch_operands = 1 : i64, tpu.core_type = #tpu.core_type<tc>, window_params = [{transform_indices = @transform_0, window_bounds = array<i64: 16, 128>}, {transform_indices = @transform_1, window_bounds = array<i64: 128, 128>}, {transform_indices = @transform_2, window_bounds = array<i64: 1, 128>}, {transform_indices = @transform_3, window_bounds = array<i64: 128, 128>}, {transform_indices = @transform_4, window_bounds = array<i64: 1, 128>}, {transform_indices = @transform_5, window_bounds = array<i64: 128, 128>}, {pipeline_mode = #tpu.pipeline_mode<synchronous>, transform_indices = @transform_6, window_bounds = array<i64: 1, 128>}, {transform_indices = @transform_7, window_bounds = array<i64: 16, 128>}]} {
    %c0_i32 = arith.constant 0 : i32
    %0 = arith.cmpi eq, %arg1, %c0_i32 : i32
    %1 = arith.extui %0 : i1 to i32
    %c0_i32_0 = arith.constant 0 : i32
    %2 = arith.cmpi ne, %1, %c0_i32_0 : i32
    scf.if %2 {
      %c0_21 = arith.constant 0 : index
      %c0_22 = arith.constant 0 : index
      %28 = vector.load %arg8[%c0_21, %c0_22] : memref<1x128xf32, #tpu.memory_space<vmem>>, vector<1x128xf32>
      %29 = vector.shape_cast %28 : vector<1x128xf32> to vector<1x128xf32>
      %30 = vector.broadcast %29 : vector<1x128xf32> to vector<16x128xf32>
      %c0_23 = arith.constant 0 : index
      %c0_24 = arith.constant 0 : index
      %31 = vector.load %arg10[%c0_23, %c0_24] : memref<16x128xf32, #tpu.memory_space<vmem>>, vector<16x128xf32>
      tpu.vector_store %arg10[%c0_23, %c0_24], %30 {strides = array<i32>} : memref<16x128xf32, #tpu.memory_space<vmem>>, vector<16x128xf32>,
    } else {
    }
    %c0 = arith.constant 0 : index
    %c0_1 = arith.constant 0 : index
    %3 = vector.load %arg2[%c0, %c0_1] : memref<16x128xf32, #tpu.memory_space<vmem>>, vector<16x128xf32>
    %c0_2 = arith.constant 0 : index
    %c0_3 = arith.constant 0 : index
    %4 = vector.load %arg3[%c0_2, %c0_3] : memref<128x128xf32, #tpu.memory_space<vmem>>, vector<128x128xf32>
    %c0_4 = arith.constant 0 : index
    %c0_5 = arith.constant 0 : index
    %5 = vector.load %arg5[%c0_4, %c0_5] : memref<128x128xf32, #tpu.memory_space<vmem>>, vector<128x128xf32>
    %c0_6 = arith.constant 0 : index
    %c0_7 = arith.constant 0 : index
    %6 = vector.load %arg7[%c0_6, %c0_7] : memref<128x128xf32, #tpu.memory_space<vmem>>, vector<128x128xf32>
    %cst = arith.constant dense<0.000000e+00> : vector<16x128xf32>
    %7 = tpu.matmul %3, %4, %cst {dimension_numbers = #tpu.dot_dimension_numbers<[1], [0], [0], [1], [0, 0, 1, 1], [], []>} : vector<16x128xf32>, vector<128x128xf32>, vector<16x128xf32> -> vector<16x128xf32>
    %c0_8 = arith.constant 0 : index
    %c0_9 = arith.constant 0 : index
    %8 = vector.load %arg4[%c0_8, %c0_9] : memref<1x128xf32, #tpu.memory_space<vmem>>, vector<1x128xf32>
    %9 = vector.broadcast %8 : vector<1x128xf32> to vector<16x128xf32>
    %10 = arith.addf %7, %9 : vector<16x128xf32>
    %cst_10 = arith.constant dense<0.000000e+00> : vector<16x128xf32>
    %11 = tpu.matmul %3, %5, %cst_10 {dimension_numbers = #tpu.dot_dimension_numbers<[1], [0], [0], [1], [0, 0, 1, 1], [], []>} : vector<16x128xf32>, vector<128x128xf32>, vector<16x128xf32> -> vector<16x128xf32>
    %c0_11 = arith.constant 0 : index
    %c0_12 = arith.constant 0 : index
    %12 = vector.load %arg6[%c0_11, %c0_12] : memref<1x128xf32, #tpu.memory_space<vmem>>, vector<1x128xf32>
    %13 = vector.broadcast %12 : vector<1x128xf32> to vector<16x128xf32>
    %14 = arith.addf %11, %13 : vector<16x128xf32>
    %15 = arith.negf %14 : vector<16x128xf32>
    %16 = math.exp %15 : vector<16x128xf32>
    %cst_13 = arith.constant 1.000000e+00 : f32
    %17 = vector.broadcast %cst_13 : f32 to vector<16x128xf32>
    %18 = arith.addf %17, %16 : vector<16x128xf32>
    %19 = arith.divf %17, %18 : vector<16x128xf32>
    %20 = arith.mulf %10, %19 : vector<16x128xf32>
    %c0_14 = arith.constant 0 : index
    %c0_15 = arith.constant 0 : index
    %21 = vector.load %arg10[%c0_14, %c0_15] : memref<16x128xf32, #tpu.memory_space<vmem>>, vector<16x128xf32>
    %cst_16 = arith.constant dense<0.000000e+00> : vector<16x128xf32>
    %22 = tpu.matmul %20, %6, %cst_16 {dimension_numbers = #tpu.dot_dimension_numbers<[1], [0], [0], [1], [0, 0, 1, 1], [], []>} : vector<16x128xf32>, vector<128x128xf32>, vector<16x128xf32> -> vector<16x128xf32>
    %23 = arith.addf %21, %22 : vector<16x128xf32>
    %c0_17 = arith.constant 0 : index
    %c0_18 = arith.constant 0 : index
    %24 = vector.load %arg10[%c0_17, %c0_18] : memref<16x128xf32, #tpu.memory_space<vmem>>, vector<16x128xf32>
    tpu.vector_store %arg10[%c0_17, %c0_18], %23 {strides = array<i32>} : memref<16x128xf32, #tpu.memory_space<vmem>>, vector<16x128xf32>,
    %c0_i32_19 = arith.constant 0 : i32
    %25 = arith.cmpi eq, %arg1, %c0_i32_19 : i32
    %26 = arith.extui %25 : i1 to i32
    %c0_i32_20 = arith.constant 0 : i32
    %27 = arith.cmpi ne, %26, %c0_i32_20 : i32
    scf.if %27 {
      %c0_21 = arith.constant 0 : index
      %c0_22 = arith.constant 0 : index
      %28 = vector.load %arg10[%c0_21, %c0_22] : memref<16x128xf32, #tpu.memory_space<vmem>>, vector<16x128xf32>
      %c0_23 = arith.constant 0 : index
      %c0_24 = arith.constant 0 : index
      %29 = vector.load %arg9[%c0_23, %c0_24] : memref<16x128xf32, #tpu.memory_space<vmem>>, vector<16x128xf32>
      tpu.vector_store %arg9[%c0_23, %c0_24], %28 {strides = array<i32>} : memref<16x128xf32, #tpu.memory_space<vmem>>, vector<16x128xf32>,
    } else {
    }
    return
  }
  func.func @transform_0(%arg0: i32, %arg1: i32) -> (i32, i32) {
    %c0_i32 = arith.constant 0 : i32
    %c0_i32_0 = arith.constant 0 : i32
    return %arg0, %c0_i32 : i32, i32
  }
  func.func @transform_1(%arg0: i32, %arg1: i32) -> (i32, i32) {
    %c0_i32 = arith.constant 0 : i32
    %c0_i32_0 = arith.constant 0 : i32
    return %c0_i32, %arg1 : i32, i32
  }
  func.func @transform_2(%arg0: i32, %arg1: i32) -> (i32, i32) {
    %c0_i32 = arith.constant 0 : i32
    %c0_i32_0 = arith.constant 0 : i32
    return %c0_i32, %arg1 : i32, i32
  }
  func.func @transform_3(%arg0: i32, %arg1: i32) -> (i32, i32) {
    %c0_i32 = arith.constant 0 : i32
    %c0_i32_0 = arith.constant 0 : i32
    return %c0_i32, %arg1 : i32, i32
  }
  func.func @transform_4(%arg0: i32, %arg1: i32) -> (i32, i32) {
    %c0_i32 = arith.constant 0 : i32
    %c0_i32_0 = arith.constant 0 : i32
    return %c0_i32, %arg1 : i32, i32
  }
  func.func @transform_5(%arg0: i32, %arg1: i32) -> (i32, i32) {
    %c0_i32 = arith.constant 0 : i32
    %c0_i32_0 = arith.constant 0 : i32
    return %arg1, %c0_i32 : i32, i32
  }
  func.func @transform_6(%arg0: i32, %arg1: i32) -> (i32, i32) {
    %c0_i32 = arith.constant 0 : i32
    %c0_i32_0 = arith.constant 0 : i32
    %c0_i32_1 = arith.constant 0 : i32
    return %c0_i32, %c0_i32_0 : i32, i32
  }
  func.func @transform_7(%arg0: i32, %arg1: i32) -> (i32, i32) {
    %c0_i32 = arith.constant 0 : i32
    %c0_i32_0 = arith.constant 0 : i32
    return %arg0, %c0_i32 : i32, i32
  }
}

</mosaic_0001>

<bundles_post_ra>
// kernel: glu_mlp_pallas.1
= control target key start
LH: loop header
LB: loop body
LE: loop exit
PB: predicated region body
PF: predicated region fallthrough
CT: control target
= control target key end

     0   :  { %s778_s0 = inlined_call_operand.vmem [shape: f32[16,128], index: 0, kind: input, shape index: {}]   ;;  %s779_s1 = inlined_call_operand.vmem [shape: f32[128,128], index: 1, kind: input, shape index: {}]   ;;  %s780_s2 = inlined_call_operand.vmem [shape: f32[1,128], index: 2, kind: input, shape index: {}]   ;;  %s781_s3 = inlined_call_operand.vmem [shape: f32[128,128], index: 3, kind: input, shape index: {}]   ;;  %s782_s4 = inlined_call_operand.vmem [shape: f32[1,128], index: 4, kind: input, shape index: {}]   ;;  %s783_s5 = inlined_call_operand.vmem [shape: f32[128,128], index: 5, kind: input, shape index: {}]   ;;  %s784_s6 = inlined_call_operand.vmem [shape: f32[1,128], index: 6, kind: input, shape index: {}]   ;;  %s785_s7 = inlined_call_operand.hbm [shape: f32[16,128], index: 7, kind: output, shape index: {}]  }
   0x1   :  { %v73_v0 = vld [vmem:[%s781_s3 + $0x78] sm:$0xff]  ;;  %v72_v1 = vld [vmem:[%s781_s3 + $0x70] sm:$0xff]  ;;  %v71_v2 = vld [vmem:[%s781_s3 + $0x68] sm:$0xff] }
   0x2   :  { %466 = vmatprep.subr.mxu1 %v73_v0  ;;  %v70_v3 = vld [vmem:[%s781_s3 + $0x60] sm:$0xff]  ;;  %v57_v4 = vld [vmem:[%s779_s1 + $0x78] sm:$0xff]  ;;  %v56_v7 = vld [vmem:[%s779_s1 + $0x70] sm:$0xff] }
   0x3   :  { %467 = vmatpush3.msra.mxu1 %v73_v0  ;;  %v630_v5 = vld [vmem:[%s778_s0] sm:$0xff]  ;;  %v69_v6 = vld [vmem:[%s781_s3 + $0x58] sm:$0xff]  ;;  %431 = vmatprep.subr.mxu0 %v57_v4  ;;  %v68_v8 = vld [vmem:[%s781_s3 + $0x50] sm:$0xff] }
   0x4   :  { %468 = vmatprep.subr.mxu1 %v72_v1  ;;  %432 = vmatpush3.msra.mxu0 %v57_v4  ;;  %v55_v9 = vld [vmem:[%s779_s1 + $0x68] sm:$0xff]  ;;  %v54_v11 = vld [vmem:[%s779_s1 + $0x60] sm:$0xff] }
   0x5   :  { %469 = vmatpush3.msra.mxu1 %v72_v1  ;;  %498 = vmatprep.mubr.f32.mxu1 %v630_v5  ;;  %v67_v10 = vld [vmem:[%s781_s3 + $0x48] sm:$0xff] }
   0x6   :  { %470 = vmatprep.subr.mxu1 %v71_v2  ;;  %433 = vmatprep.subr.mxu0 %v56_v7 }
   0x7   :  { %471 = vmatpush3.msra.mxu1 %v71_v2  ;;  %434 = vmatpush3.msra.mxu0 %v56_v7 }
   0x8   :  { %472 = vmatprep.subr.mxu1 %v70_v3  ;;  %435 = vmatprep.subr.mxu0 %v55_v9 }
   0x9   :  { %473 = vmatpush3.msra.mxu1 %v70_v3 }
   0xa   :  { %474 = vmatprep.subr.mxu1 %v69_v6 }
   0xb   :  { %475 = vmatpush3.msra.mxu1 %v69_v6 }
   0xc   :  { %476 = vmatprep.subr.mxu1 %v68_v8 }
   0xd   :  { %12 = vsyncpa [#allocation4], 0  ;;  %477 = vmatpush3.msra.mxu1 %v68_v8  ;;  %v66_v12 = vld [vmem:[%s781_s3 + $0x40] sm:$0xff]  ;;  %436 = vmatpush3.msra.mxu0 %v55_v9  ;;  %v53_v13 = vld [vmem:[%s779_s1 + $0x58] sm:$0xff]  ;;  %s569_s30 = smov [#allocation3]  }
   0xe   :  { %478 = vmatprep.subr.mxu1 %v67_v10  ;;  %437 = vmatprep.subr.mxu0 %v54_v11  ;;  %v65_v14 = vld [vmem:[%s781_s3 + $0x38] sm:$0xff]  ;;  %v52_v15 = vld [vmem:[%s779_s1 + $0x50] sm:$0xff]  ;;  %v51_v17 = vld [vmem:[%s779_s1 + $0x48] sm:$0xff]  ;;  %s361_s8 = sshll.u32 %s569_s30, 4  ;;  %s362_s8 = int_to_ptr.vmem [resolvable:$true] %s361_s8 }
   0xf   :  { %479 = vmatpush3.msra.mxu1 %v67_v10  ;;  %438 = vmatpush3.msra.mxu0 %v54_v11  ;;  %v64_v16 = vld [vmem:[%s781_s3 + $0x30] sm:$0xff]  ;;  %v63_v18 = vld [vmem:[%s781_s3 + $0x28] sm:$0xff]  ;;  %v50_v19 = vld [vmem:[%s779_s1 + $0x40] sm:$0xff]  ;;  %p552_p1 = scmp.lt.s32.totalorder %s362_s8, %s362_s8 }
  0x10   :  { %480 = vmatprep.subr.mxu1 %v66_v12  ;;  %439 = vmatprep.subr.mxu0 %v53_v13  ;;  %v62_v20 = vld [vmem:[%s781_s3 + $0x20] sm:$0xff]  ;;  %v49_v21 = vld [vmem:[%s779_s1 + $0x38] sm:$0xff]  ;;  %v48_v23 = vld [vmem:[%s779_s1 + $0x30] sm:$0xff] }
  0x11   :  { %481 = vmatpush3.msra.mxu1 %v66_v12  ;;  %440 = vmatpush3.msra.mxu0 %v53_v13  ;;  %v61_v22 = vld [vmem:[%s781_s3 + $0x18] sm:$0xff]  ;;  %v60_v24 = vld [vmem:[%s781_s3 + $0x10] sm:$0xff]  ;;  %v47_v25 = vld [vmem:[%s779_s1 + $0x28] sm:$0xff] }
  0x12   :  { %482 = vmatprep.subr.mxu1 %v65_v14  ;;  %441 = vmatprep.subr.mxu0 %v52_v15  ;;  %v59_v26 = vld [vmem:[%s781_s3 + $0x8] sm:$0xff]  ;;  %v46_v27 = vld [vmem:[%s779_s1 + $0x20] sm:$0xff]  ;;  %v45_v29 = vld [vmem:[%s779_s1 + $0x18] sm:$0xff] }
  0x13   :  { %483 = vmatpush3.msra.mxu1 %v65_v14  ;;  %442 = vmatpush3.msra.mxu0 %v52_v15  ;;  %v58_v28 = vld [vmem:[%s781_s3] sm:$0xff]  ;;  %v41_v30 = vld [vmem:[%s778_s0 + $0x8] sm:$0xff]  ;;  %v44_v31 = vld [vmem:[%s779_s1 + $0x10] sm:$0xff] }
  0x14   :  { %484 = vmatprep.subr.mxu1 %v64_v16  ;;  %443 = vmatprep.subr.mxu0 %v51_v17  ;;  %v43_v32 = vld [vmem:[%s779_s1 + $0x8] sm:$0xff]  ;;  %v42_v33 = vld [vmem:[%s779_s1] sm:$0xff]  ;;  %v89_v34 = vld [vmem:[%s783_s5 + $0x78] sm:$0xff] }
  0x15   :  { %485 = vmatpush3.msra.mxu1 %v64_v16  ;;  %444 = vmatpush3.msra.mxu0 %v51_v17  ;;  %v88_v35 = vld [vmem:[%s783_s5 + $0x70] sm:$0xff]  ;;  %v87_v36 = vld [vmem:[%s783_s5 + $0x68] sm:$0xff]  ;;  %v86_v37 = vld [vmem:[%s783_s5 + $0x60] sm:$0xff] }
  0x16   :  { %486 = vmatprep.subr.mxu1 %v63_v18  ;;  %445 = vmatprep.subr.mxu0 %v50_v19  ;;  %v85_v38 = vld [vmem:[%s783_s5 + $0x58] sm:$0xff]  ;;  %v84_v39 = vld [vmem:[%s783_s5 + $0x50] sm:$0xff]  ;;  %v83_v40 = vld [vmem:[%s783_s5 + $0x48] sm:$0xff] }
  0x17   :  { %487 = vmatpush3.msra.mxu1 %v63_v18  ;;  %446 = vmatpush3.msra.mxu0 %v50_v19  ;;  %v82_v41 = vld [vmem:[%s783_s5 + $0x40] sm:$0xff]  ;;  %v81_v42 = vld [vmem:[%s783_s5 + $0x38] sm:$0xff]  ;;  %v80_v43 = vld [vmem:[%s783_s5 + $0x30] sm:$0xff] }
  0x18   :  { %488 = vmatprep.subr.mxu1 %v62_v20  ;;  %447 = vmatprep.subr.mxu0 %v49_v21  ;;  %v79_v44 = vld [vmem:[%s783_s5 + $0x28] sm:$0xff]  ;;  %v78_v45 = vld [vmem:[%s783_s5 + $0x20] sm:$0xff]  ;;  %v77_v46 = vld [vmem:[%s783_s5 + $0x18] sm:$0xff] }
  0x19   :  { %489 = vmatpush3.msra.mxu1 %v62_v20  ;;  %448 = vmatpush3.msra.mxu0 %v49_v21  ;;  %v76_v47 = vld [vmem:[%s783_s5 + $0x10] sm:$0xff]  ;;  %v75_v48 = vld [vmem:[%s783_s5 + $0x8] sm:$0xff]  ;;  %v74_v49 = vld [vmem:[%s783_s5] sm:$0xff] }
  0x1a   :  { %490 = vmatprep.subr.mxu1 %v61_v22  ;;  %449 = vmatprep.subr.mxu0 %v48_v23  ;;  %v374_v50 = vld [vmem:[%s782_s4] ss:$0 sm:$0xff] }
  0x1b   :  { %491 = vmatpush3.msra.mxu1 %v61_v22  ;;  %450 = vmatpush3.msra.mxu0 %v48_v23  ;;  %v373_v62 = vld [vmem:[%s780_s2] ss:$0 sm:$0xff]  ;;  %s547_s2 = scalar_lea.vmem %s362_s8, 256 }
  0x1c   :  { %492 = vmatprep.subr.mxu1 %v60_v24  ;;  %451 = vmatprep.subr.mxu0 %v47_v25  ;;  %v372_v6 = vld [vmem:[%s784_s6] ss:$0 sm:$0xff]  ;;  %p548_p0 = scmp.ne.s32.totalorder %s362_s8, %s547_s2  ;;  %p553_p2 = scmp.lt.s32.totalorder %s547_s2, %s547_s2 }
  0x1d   :  { %493 = vmatpush3.msra.mxu1 %v60_v24  ;;  %452 = vmatpush3.msra.mxu0 %v47_v25 }
  0x1e   :  { %494 = vmatprep.subr.mxu1 %v59_v26  ;;  %453 = vmatprep.subr.mxu0 %v46_v27  ;;  %p554_p3 = por %p553_p2, %p552_p1 }
  0x1f   :  { %495 = vmatpush3.msra.mxu1 %v59_v26  ;;  %454 = vmatpush3.msra.mxu0 %v46_v27 }
  0x20   :  { %496 = vmatprep.subr.mxu1 %v58_v28  ;;  %455 = vmatprep.subr.mxu0 %v45_v29  ;;  %p555_p4 = pnand %p554_p3, %p548_p0 }
  0x21   :  { %497 = vmatpush3.msra.mxu1 %v58_v28  ;;  %456 = vmatpush3.msra.mxu0 %v45_v29 }
  0x22   :  { %499 = vmatmul.mubr.f32.vlgmr.msra.gmra.mxu1 %v41_v30  ;;  %457 = vmatprep.subr.mxu0 %v44_v31 }
  0x23   :  { %458 = vmatpush3.msra.mxu0 %v44_v31  ;;  %463 = vmatprep.mubr.f32.mxu0 %v630_v5 }
  0x24   :  { %459 = vmatprep.subr.mxu0 %v43_v32 }
  0x25   :  { %460 = vmatpush3.msra.mxu0 %v43_v32 }
  0x26   :  { %461 = vmatprep.subr.mxu0 %v42_v33 }
  0x27   :  { %462 = vmatpush3.msra.mxu0 %v42_v33 }
  0x28   :  { %464 = vmatmul.mubr.f32.vlgmr.msra.gmra.mxu0 %v41_v30  ;;  %501 = vmatprep.subr.mxu0 %v89_v34 }
  0x29   :  { %502 = vmatpush3.msra.mxu0 %v89_v34 }
  0x2a   :  { %503 = vmatprep.subr.mxu0 %v88_v35 }
  0x2b   :  { %504 = vmatpush3.msra.mxu0 %v88_v35 }
  0x2c   :  { %505 = vmatprep.subr.mxu0 %v87_v36 }
  0x2d   :  { %506 = vmatpush3.msra.mxu0 %v87_v36 }
  0x2e   :  { %507 = vmatprep.subr.mxu0 %v86_v37 }
  0x2f   :  { %508 = vmatpush3.msra.mxu0 %v86_v37 }
  0x30   :  { %509 = vmatprep.subr.mxu0 %v85_v38 }
  0x31   :  { %510 = vmatpush3.msra.mxu0 %v85_v38 }
  0x32   :  { %511 = vmatprep.subr.mxu0 %v84_v39 }
  0x33   :  { %512 = vmatpush3.msra.mxu0 %v84_v39 }
  0x34   :  { %513 = vmatprep.subr.mxu0 %v83_v40 }
  0x35   :  { %514 = vmatpush3.msra.mxu0 %v83_v40 }
  0x36   :  { %515 = vmatprep.subr.mxu0 %v82_v41 }
  0x37   :  { %516 = vmatpush3.msra.mxu0 %v82_v41 }
  0x38   :  { %517 = vmatprep.subr.mxu0 %v81_v42 }
  0x39   :  { %518 = vmatpush3.msra.mxu0 %v81_v42 }
  0x3a   :  { %519 = vmatprep.subr.mxu0 %v80_v43 }
  0x3b   :  { %520 = vmatpush3.msra.mxu0 %v80_v43 }
  0x3c   :  { %521 = vmatprep.subr.mxu0 %v79_v44 }
  0x3d   :  { %522 = vmatpush3.msra.mxu0 %v79_v44 }
  0x3e   :  { %523 = vmatprep.subr.mxu0 %v78_v45 }
  0x3f   :  { %524 = vmatpush3.msra.mxu0 %v78_v45 }
  0x40   :  { %525 = vmatprep.subr.mxu0 %v77_v46 }
  0x41   :  { %526 = vmatpush3.msra.mxu0 %v77_v46 }
  0x42   :  { %527 = vmatprep.subr.mxu0 %v76_v47 }
  0x43   :  { %528 = vmatpush3.msra.mxu0 %v76_v47 }
  0x44   :  { %529 = vmatprep.subr.mxu0 %v75_v48 }
  0x45   :  { %530 = vmatpush3.msra.mxu0 %v75_v48 }
  0x46   :  { %531 = vmatprep.subr.mxu0 %v74_v49 }
  0x47   :  { %532 = vmatpush3.msra.mxu0 %v74_v49 }
  0xe2   :  { %v500_v51 = vpop.f32.mrf.mxu1 }
  0xe3   :  { %v251_v52 = vadd.f32 %v500_v51, %v374_v50 }
  0xe4   :  { %v245_v53 = vpop.f32.mrf.mxu1 }
  0xe5   :  { %v376_v54 = vmul.f32 -1.442695, %v251_v52  ;;  %v246_v55 = vadd.f32 %v374_v50, %v245_v53 }
  0xe7   :  { %539 = vpow2.f32 %v376_v54  ;;  %v375_v56 = vmul.f32 -1.442695, %v246_v55 }
  0xe8   :  { %v465_v61 = vpop.f32.mrf.mxu0 }
  0xe9   :  { %541 = vpow2.f32 %v375_v56  ;;  %v169_v0 = vadd.f32 %v465_v61, %v373_v62 }
  0xea   :  { %v163_v63 = vpop.f32.mrf.mxu0 }
  0xeb   :  { %v164_v2 = vadd.f32 %v373_v62, %v163_v63 }
  0xf4   :  { %v540_v57 = vpop.eup %539 }
  0xf5   :  { %v261_v58 = vadd.f32 1.0, %v540_v57 }
  0xf6   :  { %v542_v59 = vpop.eup %541 }
  0xf7   :  { %v260_v60 = vadd.f32 1.0, %v542_v59  ;;  %543 = vrcp.f32 %v261_v58 }
  0xf9   :  { %545 = vrcp.f32 %v260_v60 }
 0x104   :  { %v544_v1 = vpop.eup %543 }
 0x105   :  { %v267_v5 = vmul.f32 %v544_v1, %v169_v0 }
 0x106   :  { %v546_v3 = vpop.eup %545 }
 0x107   :  { %v266_v4 = vmul.f32 %v546_v3, %v164_v2 }
 0x109   :  { %533 = vmatprep.mubr.f32.mxu0 %v266_v4 }
 0x10a   :  { %534 = vmatmul.mubr.f32.vlgmr.msra.gmra.mxu0 %v267_v5 }
 0x1ca   :  { %v535_v7 = vpop.f32.mrf.mxu0 }
 0x1cb   :  { %v346_v8 = vadd.f32 %v535_v7, %v372_v6 }
 0x1cc   :  { %v336_v9 = vpop.f32.mrf.mxu0 }
 0x1cd   :  { %355 = vst [vmem:[#allocation3 + $0x8] sm:$0xff] %v346_v8  ;;  %v345_v10 = vadd.f32 %v372_v6, %v336_v9 }
 0x1cf   :  { %354 = vst [vmem:[#allocation3] sm:$0xff] %v345_v10 }
 0x1d0   :  { %558 = shalt.err (!%p555_p4)
}
 0x1d1   :  { %s570_s9 = smov 128   ;;  %s571_s10 = smov 8  }
 0x1d2   :  { %367 = dma.vmem_to_hbm [thread:$0]  %s362_s8, 256, %s785_s7, [#allocation4], %s570_s9, %s570_s9, %s571_s10  }
 0x1d3   :  { %567 = dma.done.wait [#allocation4], 256  }
 0x1d4   :  { %568 = vsyncadd [#allocation4], 4294967040 }
 0x1d5   :  { %371 = vsyncpa [#allocation4], 1 }

</bundles_post_ra>
